<compile_context>
chip_gen: v7x
topology: tpu7x:2x2x1
jax: 0.10.0
libtpu: 0.0.40
codegen_flags: <defaults>
</compile_context>

<pallas_src>
import functools

import jax
import jax.numpy as jnp
from jax.experimental import pallas as pl
from jax.experimental.pallas import tpu as pltpu


_LANE = 128
_TARGET_BLOCK_BYTES = 4 * 1024 * 1024     # ~4 MiB blocks (v6e/v7x sweet spot)
_MIN_BLOCK_BYTES = 256 * 1024             # never shrink blocks below this
_VMEM_LIMIT_BYTES = 32 * 1024 * 1024      # 4x 4 MiB (dbl-buffered in+out) + headroom
_PALLAS_MIN_BYTES = 1 * 1024 * 1024       # below this the fused XLA clip wins
_MAX_NCHW_BLOCK_BYTES = 12 * 1024 * 1024  # hard cap for the NCHW fallback path


def _sublane_pack(itemsize: int) -> int:
    """Native sublane packing per dtype width (f32:8, bf16/f16:16, int8/fp8:32)."""
    return {1: 32, 2: 16}.get(itemsize, 8)


def _largest_divisor_leq(total: int, cap: int, unit: int) -> int:
    """Largest divisor of `total` that is <= cap and a multiple of `unit`; 0 if none."""
    cap = min(cap, total)
    best = 0
    i = 1
    while i * i <= total:
        if total % i == 0:
            for d in (i, total // i):
                if d <= cap and d % unit == 0 and d > best:
                    best = d
        i += 1
    return best


def _plan_slab_tiles(n: int, hw: int, itemsize: int, out_bytes: int):
    """Tile plan (tile_n, tile_hw) for the lane-dense slab path, or None if H*W
    has no divisor that is a multiple of 128 (lane-dense tiling impossible)."""
    pack = _sublane_pack(itemsize)
    # Scale the per-block budget down for mid-size inputs so we always get a
    # handful of blocks (pipeline overlap + megacore sharding), never below
    # _MIN_BLOCK_BYTES, never above _TARGET_BLOCK_BYTES.
    target = min(_TARGET_BLOCK_BYTES, max(_MIN_BLOCK_BYTES, out_bytes // 8))

    min_rows = min(pack, n)
    col_cap = max(_LANE, target // max(1, min_rows * itemsize))
    tile_hw = _largest_divisor_leq(hw, col_cap, _LANE)
    if tile_hw == 0:
        return None

    rows_budget = max(1, target // (tile_hw * itemsize))
    if n <= pack:
        tile_n = n                                    # full dim -> always legal
    else:
        tile_n = max(pack, (min(n, rows_budget) // pack) * pack)
    return tile_n, tile_hw


def _make_clip_kernel(h_bound: int, w_bound: int):
    """Whole-block clip against a scalar bound chosen by the channel grid index
    (grid axis 0): channel 0 -> +/-W, channel 1 -> +/-H. 2 VPU ops/element."""

    def kernel(x_ref, o_ref):
        dt = x_ref.dtype
        bound = jnp.where(
            pl.program_id(0) == 0,
            jnp.asarray(w_bound, dt),   # channel 0 -> +/- W
            jnp.asarray(h_bound, dt),   # channel 1 -> +/- H
        )
        x = x_ref[...]
        o_ref[...] = jnp.minimum(jnp.maximum(x, -bound), bound).astype(o_ref.dtype)

    return kernel


def _last_limit_slab(x: jax.Array, N: int, C: int, H: int, W: int,
                     tile_n: int, tile_hw: int) -> jax.Array:
    """Primary path: lane-dense (N, C*H*W) view; the index_map selects the
    channel's column range, so no staged x[:, :2] copy and no pads/trims."""
    hw = H * W
    x2 = x.reshape(N, C * hw)           # free (contiguous) view
    cpc = hw // tile_hw                 # column blocks per channel
    grid = (2, pl.cdiv(N, tile_n), cpc)
    spec = pl.BlockSpec((tile_n, tile_hw), lambda c, i, j: (i, c * cpc + j))

    # Note: no input_output_aliases -- input (N, C*H*W) and output (N, 2*H*W)
    # only match for C == 2, and we don't require the caller to donate x.
    out2 = pl.pallas_call(
        _make_clip_kernel(H, W),
        out_shape=jax.ShapeDtypeStruct((N, 2 * hw), x.dtype),
        grid=grid,
        in_specs=[spec],
        out_specs=spec,
        compiler_params=pltpu.CompilerParams(
            dimension_semantics=("parallel", "parallel", "parallel"),
            vmem_limit_bytes=_VMEM_LIMIT_BYTES,
        ),
    )(x2)
    return out2.reshape(N, 2, H, W)     # free reshape


def _last_limit_nchw(x: jax.Array, N: int, C: int, H: int, W: int,
                     tile_n: int) -> jax.Array:
    """Secondary path: raw NCHW view with full-(H, W) blocks (always layout
    legal, channel still selected by the DMA). Used when H*W has no
    128-multiple divisor."""
    grid = (2, pl.cdiv(N, tile_n))
    spec = pl.BlockSpec((tile_n, 1, H, W), lambda c, i: (i, c, 0, 0))
    return pl.pallas_call(
        _make_clip_kernel(H, W),
        out_shape=jax.ShapeDtypeStruct((N, 2, H, W), x.dtype),
        grid=grid,
        in_specs=[spec],
        out_specs=spec,
        compiler_params=pltpu.CompilerParams(
            dimension_semantics=("parallel", "parallel"),
            vmem_limit_bytes=_VMEM_LIMIT_BYTES,
        ),
    )(x)


def _last_limit_xla(x: jax.Array) -> jax.Array:
    """Fused XLA clip for tiny inputs / pathological shapes."""
    _, _, H, W = x.shape
    dt = x.dtype
    c0 = jnp.clip(x[:, 0:1], jnp.asarray(-W, dt), jnp.asarray(W, dt))
    c1 = jnp.clip(x[:, 1:2], jnp.asarray(-H, dt), jnp.asarray(H, dt))
    return jnp.concatenate([c0, c1], axis=1)


@functools.partial(jax.jit, static_argnames=("force_pallas",))
def last_limit(x: jax.Array, *, force_pallas: bool = False) -> jax.Array:
    """LastLimit.forward: (N, C, H, W) -> (N, 2, H, W)."""
    N, C, H, W = x.shape
    assert C >= 2, "LastLimit requires at least 2 channels"

    hw = H * W
    itemsize = jnp.dtype(x.dtype).itemsize
    out_bytes = 2 * N * hw * itemsize

    if not force_pallas and out_bytes < _PALLAS_MIN_BYTES:
        # Tiny tensors: pallas_call launch/pipeline overhead dwarfs HBM traffic.
        return _last_limit_xla(x)

    plan = _plan_slab_tiles(N, hw, itemsize, out_bytes)
    if plan is not None:
        tile_n, tile_hw = plan
        return _last_limit_slab(x, N, C, H, W, tile_n, tile_hw)

    # H*W has no 128-multiple divisor (or hw < 128): full-(H, W) NCHW blocks.
    block_bytes = hw * itemsize
    if block_bytes > _MAX_NCHW_BLOCK_BYTES:
        # TODO(synk): no clean Pallas tiling for huge prime-ish H*W without
        # padding copies; use the fused XLA clip for that pathological case.
        return _last_limit_xla(x)
    target = min(_TARGET_BLOCK_BYTES, max(_MIN_BLOCK_BYTES, out_bytes // 8))
    tile_n = max(1, min(N, target // block_bytes))
    return _last_limit_nchw(x, N, C, H, W, tile_n)


def last_limit_ref(x: jax.Array) -> jax.Array:
    """Pure-JAX reference mirroring the PyTorch forward."""
    _, _, H, W = x.shape
    c0 = jnp.clip(x[:, 0:1, :, :], -W, W)
    c1 = jnp.clip(x[:, 1:2, :, :], -H, H)
    return jnp.concatenate([c0, c1], axis=1)


if __name__ == "__main__":
    key = jax.random.PRNGKey(0)
    N, C, H, W = 2, 4, 16, 16
    # Scale inputs so the clamp actually triggers (bounds are +/-16).
    x = jax.random.normal(key, (N, C, H, W), dtype=jnp.float32) * 32.0

    ref = last_limit_ref(x)

    # Primary lane-dense slab path (channel selection in the DMA).
    out = jax.block_until_ready(last_limit(x, force_pallas=True))
    assert out.shape == (N, 2, H, W), out.shape
    assert out.dtype == x.dtype, out.dtype
    assert jnp.array_equal(out, ref), "slab-path mismatch vs reference"

    # Secondary NCHW path (H*W has no 128-multiple divisor).
    x2 = jax.random.normal(jax.random.PRNGKey(1), (3, 3, 12, 10), jnp.float32) * 40.0
    out2 = jax.block_until_ready(last_limit(x2, force_pallas=True))
    assert jnp.array_equal(out2, last_limit_ref(x2)), "nchw-path mismatch vs reference"

    # Default dispatch (tiny input -> fused XLA clip).
    out_auto = jax.block_until_ready(last_limit(x))
    assert jnp.array_equal(out_auto, ref), "fast-path mismatch vs reference"

    print("KERNEL_OK")
</pallas_src>

<mosaic_0001>
module attributes {stable_mosaic.version = 11 : i64} {
  func.func @kernel(%arg0: i32, %arg1: i32, %arg2: i32, %arg3: memref<2x256xf32, #tpu.memory_space<vmem>>, %arg4: memref<2x256xf32, #tpu.memory_space<vmem>>) attributes {dimension_semantics = [#tpu.dimension_semantics<parallel>, #tpu.dimension_semantics<parallel>, #tpu.dimension_semantics<parallel>], iteration_bounds = array<i64: 2, 1, 1>, scalar_prefetch = 0 : i64, scratch_operands = 0 : i64, tpu.core_type = #tpu.core_type<tc>, window_params = [{transform_indices = @transform_0, window_bounds = array<i64: 2, 256>}, {transform_indices = @transform_1, window_bounds = array<i64: 2, 256>}]} {
    %c0_i32 = arith.constant 0 : i32
    %0 = arith.cmpi eq, %arg0, %c0_i32 : i32
    %cst = arith.constant 1.600000e+01 : f32
    %cst_0 = arith.constant 1.600000e+01 : f32
    %1 = arith.select %0, %cst, %cst_0 : f32
    %c0 = arith.constant 0 : index
    %c0_1 = arith.constant 0 : index
    %2 = vector.load %arg3[%c0, %c0_1] : memref<2x256xf32, #tpu.memory_space<vmem>>, vector<2x256xf32>
    %cst_2 = arith.constant 0.000000e+00 : f32
    %3 = arith.subf %cst_2, %1 : f32
    %4 = vector.broadcast %3 : f32 to vector<2x256xf32>
    %5 = arith.maximumf %2, %4 : vector<2x256xf32>
    %6 = vector.broadcast %1 : f32 to vector<2x256xf32>
    %7 = arith.minimumf %5, %6 : vector<2x256xf32>
    %c0_3 = arith.constant 0 : index
    %c0_4 = arith.constant 0 : index
    %8 = vector.load %arg4[%c0_3, %c0_4] : memref<2x256xf32, #tpu.memory_space<vmem>>, vector<2x256xf32>
    tpu.vector_store %arg4[%c0_3, %c0_4], %7 {strides = array<i32>} : memref<2x256xf32, #tpu.memory_space<vmem>>, vector<2x256xf32>,
    return
  }
  func.func @transform_0(%arg0: i32, %arg1: i32, %arg2: i32) -> (i32, i32) {
    %c1_i32 = arith.constant 1 : i32
    %0 = arith.muli %arg0, %c1_i32 : i32
    %1 = arith.addi %0, %arg2 : i32
    %c0_i32 = arith.constant 0 : i32
    return %arg1, %1 : i32, i32
  }
  func.func @transform_1(%arg0: i32, %arg1: i32, %arg2: i32) -> (i32, i32) {
    %c1_i32 = arith.constant 1 : i32
    %0 = arith.muli %arg0, %c1_i32 : i32
    %1 = arith.addi %0, %arg2 : i32
    %c0_i32 = arith.constant 0 : i32
    return %arg1, %1 : i32, i32
  }
}

</mosaic_0001>

<bundles_post_ra>
// kernel: last_limit.1
= control target key start
LH: loop header
LB: loop body
LE: loop exit
PB: predicated region body
PF: predicated region fallthrough
CT: control target
= control target key end

     0   :  { %s342_s6 = smov 0   ;;  %s344_s7 = smov 0   ;;  %s363_s0 = inlined_call_operand.vmem [shape: f32[2,1024], index: 0, kind: input, shape index: {}]   ;;  %s364_s1 = inlined_call_operand.vmem [shape: f32[2,512], index: 1, kind: output, shape index: {}]  }
   0x1   :  { %s346_s8 = smov 0  }
   0x2 LB: > { %s30_s9 = sadd.s32 1, %s326_s7  ;;  %p276_p0 = scmp.ge.s32.totalorder %s330_s8, 1  ;;  %s330_s8 = sphi %s346_s8, %s11_s8   ;;  %s326_s7 = sphi %s344_s7, %s366_s7   ;;  %s322_s6 = sphi %s342_s6, %s365_s6  }
   0x3   : > { %p32_p1 = scmp.ge.s32.totalorder %s30_s9, 2  ;;  %p121_p2 = scmp.lt.s32.totalorder %s330_s8, 3 }
   0x5   : > { %s368_s9 = smov (%p32_p1, %s30_s9), 0  ;;  %p122_p3 = pnand %p276_p0, %p121_p2 }
   0x6   : > { %s277_s10 = sshll.u32 (!%p122_p3), %s322_s6, 1 }
   0x7   : > { %125 = sbr.rel (%p122_p3) target bundleno = 22 (0x16), region = 24  ;;  %p155_p4 = scmp.lt.s32.totalorder (!%p122_p3), %s277_s10, 7 }
   0x8   : > { %p167_p5 = scmp.lt.s32.totalorder (!%p122_p3), %s277_s10, 3 }
   0xe   : > { %s156_s11 = scalar_select %p155_p4, %s277_s10, 7 }
   0xf   : > { %s370_s10 = smov (!%p167_p5, %s277_s10), 3 }
  0x10   : > { %s278_s12 = sshll.u32 %s156_s11, 1  ;;  %s280_s16 = sshll.u32 %s370_s10, 1 }
  0x11   : > { %s160_s15 = scalar_lea.vmem %s363_s0, %s278_s12  ;;  %s172_s19 = scalar_lea.vmem %s364_s1, %s280_s16 }
  0x12   : > { %v175_v0 = vld [vmem:[%s160_s15] sm:$0xf] }
  0x13   : > { %v281_v1 = vclamps-f32 %v175_v0, 16.0 }
  0x15   : > { %178 = vst [vmem:[%s172_s19] sm:$0xf] %v281_v1 }
  0x16 PF: > { %s11_s8 = sadd.s32 1, %s330_s8   ;;  %s365_s6 = smov %s326_s7 }
  0x17   : > { %p8_p6 = scmp.ge.s32.totalorder %s11_s8, 4   ;;  %s366_s7 = smov %s368_s9 }
  0x19   :  { %10 = sbr.rel (!%p8_p6) target bundleno = 2 (0x2), region = 54 }

</bundles_post_ra>
